<compile_context>
chip_gen: v7x
topology: tpu7x:2x2x1
jax: 0.10.0
libtpu: 0.0.40
codegen_flags: <defaults>
</compile_context>

<pallas_src>
import jax
import jax.numpy as jnp
from jax.experimental import pallas as pl
from jax.experimental.pallas import tpu as pltpu

LANE = 128
NUM_FEATURES = 11
NUM_CLASSES = 2
DEFAULT_BLOCK_B = 8192


def _round_up(x, m):
    return ((x + m - 1) // m) * m


def _cdiv(a, b):
    return (a + b - 1) // b


def mlp_kernel_t(xt_ref,
                 w1_ref, b1_ref,
                 w2_ref, b2_ref,
                 w3_ref, b3_ref,
                 w4_ref, b4_ref,
                 out_ref):
    """One batch tile in the batch-on-lanes layout.

    xt_ref : [F, TB]      bf16  (batch rides the lane axis)
    wK_ref : [outK, inK]  bf16  (torch-layout weights, MXU LHS, VMEM-resident)
    bK_ref : [outK, 1]    f32   (broadcast along lanes)
    out_ref: [2, TB]      f32   (logits^T, lane-dense store)
    """
    x = xt_ref[...]

    h = jnp.dot(w1_ref[...], x, preferred_element_type=jnp.float32) + b1_ref[...]
    h = jnp.maximum(h, 0.0)
    # TODO(synk): nn.Dropout(0.3) / nn.Dropout(0.2) are identities in eval mode;
    # training-mode dropout is not emitted.

    h = jnp.dot(w2_ref[...], h.astype(jnp.bfloat16),
                preferred_element_type=jnp.float32) + b2_ref[...]
    h = jnp.maximum(h, 0.0)

    h = jnp.dot(w3_ref[...], h.astype(jnp.bfloat16),
                preferred_element_type=jnp.float32) + b3_ref[...]
    h = jnp.maximum(h, 0.0)

    h = jnp.dot(w4_ref[...], h.astype(jnp.bfloat16),
                preferred_element_type=jnp.float32) + b4_ref[...]

    out_ref[...] = h.astype(out_ref.dtype)


def choose_batch_tile(batch, block_b=DEFAULT_BLOCK_B):
    """Batch tile: multiple of 128 lanes, <= block_b, capped so large batches produce
    >= 4 grid steps (keeps both v7x TensorCores fed; no-op on single-TC v5e/v6e)."""
    block_b = max(LANE, _round_up(block_b, LANE))
    b_pad = _round_up(max(batch, 1), LANE)
    quarter = max(LANE, _round_up(_cdiv(b_pad, 4), LANE))
    return min(block_b, quarter)


def pack_params(params):
    """One-time parameter prep (hoist out of the per-call path): torch-layout [out, in]
    weights cast to bf16 (they are directly the MXU LHS in the transposed compute) and
    biases reshaped to [out, 1] f32 so they broadcast along the lane/batch axis."""
    packed = {}
    for i in range(1, 5):
        packed[f"w{i}"] = params[f"w{i}"].astype(jnp.bfloat16)
        packed[f"b{i}"] = params[f"b{i}"].astype(jnp.float32).reshape(-1, 1)
    return packed


def prepare_features(features, tb):
    """One-time data ingest: [B, F] f32 -> [F, B_pad] bf16 with the batch padded to a
    multiple of the batch tile. Do this once per dataset, not once per forward call."""
    B, _ = features.shape
    b_pad = _round_up(B, tb)
    xt = features.astype(jnp.bfloat16).T
    if b_pad != B:
        xt = jnp.pad(xt, ((0, 0), (0, b_pad - B)))
    return xt, B


def glaucoma_forward_packed(xt, packed, *, tb):
    """Steady-state forward: prepared input [F, B_pad] bf16 + packed params.
    Returns logits^T [NUM_CLASSES, B_pad] f32."""
    F, b_pad = xt.shape
    assert tb % LANE == 0 and b_pad % tb == 0, (tb, b_pad)
    grid = (b_pad // tb,)

    batch_map = lambda i: (0, i)
    const_map = lambda i: (0, 0)
    resident = lambda a: pl.BlockSpec(a.shape, const_map)  # VMEM-resident across tiles

    return pl.pallas_call(
        mlp_kernel_t,
        out_shape=jax.ShapeDtypeStruct((NUM_CLASSES, b_pad), jnp.float32),
        grid=grid,
        in_specs=[
            pl.BlockSpec((F, tb), batch_map),
            resident(packed["w1"]), resident(packed["b1"]),
            resident(packed["w2"]), resident(packed["b2"]),
            resident(packed["w3"]), resident(packed["b3"]),
            resident(packed["w4"]), resident(packed["b4"]),
        ],
        out_specs=pl.BlockSpec((NUM_CLASSES, tb), batch_map),
        compiler_params=pltpu.CompilerParams(
            dimension_semantics=("parallel",),  # megacore sharding on v7x
        ),
    )(xt, packed["w1"], packed["b1"], packed["w2"], packed["b2"],
      packed["w3"], packed["b3"], packed["w4"], packed["b4"])


def glaucoma_classifier_forward(features, params, *, block_b=DEFAULT_BLOCK_B):
    """Convenience wrapper: [B, num_features] f32 -> [B, 2] f32 logits.
    For repeated calls, hoist pack_params()/prepare_features() as shown in __main__."""
    B = features.shape[0]
    tb = choose_batch_tile(B, block_b)
    packed = pack_params(params)
    xt, _ = prepare_features(features, tb)
    out_t = glaucoma_forward_packed(xt, packed, tb=tb)
    return out_t[:, :B].T


def init_params(key, num_features=NUM_FEATURES):
    """Deterministic init matching the torch module's layer shapes.
    Weights in torch layout [out, in], biases [out]."""
    dims = [(num_features, 64), (64, 32), (32, 16), (16, NUM_CLASSES)]
    params = {}
    for idx, (fan_in, fan_out) in enumerate(dims, start=1):
        key, kw, kb = jax.random.split(key, 3)
        bound = 1.0 / float(fan_in) ** 0.5
        params[f"w{idx}"] = jax.random.uniform(
            kw, (fan_out, fan_in), jnp.float32, minval=-bound, maxval=bound)
        params[f"b{idx}"] = jax.random.uniform(
            kb, (fan_out,), jnp.float32, minval=-bound, maxval=bound)
    return params


def reference_forward(features, params):
    # f32 reference using the same bf16-rounded inputs/weights the kernel consumes.
    # (Kernel additionally rounds intermediate activations to bf16; tolerance covers it.)
    f32 = lambda a: a.astype(jnp.bfloat16).astype(jnp.float32)
    h = jnp.maximum(f32(features) @ f32(params["w1"]).T + params["b1"], 0.0)
    h = jnp.maximum(h @ f32(params["w2"]).T + params["b2"], 0.0)
    h = jnp.maximum(h @ f32(params["w3"]).T + params["b3"], 0.0)
    return h @ f32(params["w4"]).T + params["b4"]


if __name__ == "__main__":
    key = jax.random.PRNGKey(0)
    key, kx1, kx2 = jax.random.split(key, 3)
    params = init_params(key, num_features=NUM_FEATURES)

    # Case 1: tiny batch through the convenience wrapper (single grid step).
    B1 = 8
    feats1 = jax.random.normal(kx1, (B1, NUM_FEATURES), dtype=jnp.float32)
    out1 = jax.block_until_ready(glaucoma_classifier_forward(feats1, params))
    ref1 = reference_forward(feats1, params)
    assert out1.shape == (B1, NUM_CLASSES), out1.shape
    assert jnp.allclose(out1, ref1, atol=5e-2, rtol=5e-2), "mismatch vs reference (B=8)"

    # Case 2: steady-state path with hoisted packing/ingest; ragged batch -> padded once,
    # 3-step grid exercises the software pipeline.
    B2 = 300
    feats2 = jax.random.normal(kx2, (B2, NUM_FEATURES), dtype=jnp.float32)
    packed = pack_params(params)            # once per model load
    tb = choose_batch_tile(B2)              # -> 128 lanes, 3 grid steps
    xt2, _ = prepare_features(feats2, tb)   # once per dataset ingest
    out2_t = jax.block_until_ready(glaucoma_forward_packed(xt2, packed, tb=tb))
    out2 = out2_t[:, :B2].T
    ref2 = reference_forward(feats2, params)
    assert out2.shape == (B2, NUM_CLASSES), out2.shape
    assert jnp.allclose(out2, ref2, atol=5e-2, rtol=5e-2), "mismatch vs reference (B=300)"

    print("KERNEL_OK")
</pallas_src>

<mosaic_0001>
module attributes {stable_mosaic.version = 11 : i64} {
  func.func @mlp_kernel_t(%arg0: i32, %arg1: memref<11x128xbf16, #tpu.memory_space<vmem>>, %arg2: memref<64x11xbf16, #tpu.memory_space<vmem>>, %arg3: memref<64x1xf32, #tpu.memory_space<vmem>>, %arg4: memref<32x64xbf16, #tpu.memory_space<vmem>>, %arg5: memref<32x1xf32, #tpu.memory_space<vmem>>, %arg6: memref<16x32xbf16, #tpu.memory_space<vmem>>, %arg7: memref<16x1xf32, #tpu.memory_space<vmem>>, %arg8: memref<2x16xbf16, #tpu.memory_space<vmem>>, %arg9: memref<2x1xf32, #tpu.memory_space<vmem>>, %arg10: memref<2x128xf32, #tpu.memory_space<vmem>>) attributes {dimension_semantics = [#tpu.dimension_semantics<parallel>], iteration_bounds = array<i64: 1>, scalar_prefetch = 0 : i64, scratch_operands = 0 : i64, tpu.core_type = #tpu.core_type<tc>, window_params = [{transform_indices = @transform_0, window_bounds = array<i64: 11, 128>}, {pipeline_mode = #tpu.pipeline_mode<synchronous>, transform_indices = @transform_1, window_bounds = array<i64: 64, 11>}, {pipeline_mode = #tpu.pipeline_mode<synchronous>, transform_indices = @transform_2, window_bounds = array<i64: 64, 1>}, {pipeline_mode = #tpu.pipeline_mode<synchronous>, transform_indices = @transform_3, window_bounds = array<i64: 32, 64>}, {pipeline_mode = #tpu.pipeline_mode<synchronous>, transform_indices = @transform_4, window_bounds = array<i64: 32, 1>}, {pipeline_mode = #tpu.pipeline_mode<synchronous>, transform_indices = @transform_5, window_bounds = array<i64: 16, 32>}, {pipeline_mode = #tpu.pipeline_mode<synchronous>, transform_indices = @transform_6, window_bounds = array<i64: 16, 1>}, {pipeline_mode = #tpu.pipeline_mode<synchronous>, transform_indices = @transform_7, window_bounds = array<i64: 2, 16>}, {pipeline_mode = #tpu.pipeline_mode<synchronous>, transform_indices = @transform_8, window_bounds = array<i64: 2, 1>}, {transform_indices = @transform_9, window_bounds = array<i64: 2, 128>}]} {
    %c0 = arith.constant 0 : index
    %c0_0 = arith.constant 0 : index
    %0 = vector.load %arg1[%c0, %c0_0] : memref<11x128xbf16, #tpu.memory_space<vmem>>, vector<11x128xbf16>
    %c0_1 = arith.constant 0 : index
    %c0_2 = arith.constant 0 : index
    %1 = vector.load %arg2[%c0_1, %c0_2] : memref<64x11xbf16, #tpu.memory_space<vmem>>, vector<64x11xbf16>
    %cst = arith.constant dense<0.000000e+00> : vector<64x128xf32>
    %2 = tpu.matmul %1, %0, %cst {dimension_numbers = #tpu.dot_dimension_numbers<[1], [0], [0], [1], [0, 0, 1, 1], [], []>} : vector<64x11xbf16>, vector<11x128xbf16>, vector<64x128xf32> -> vector<64x128xf32>
    %c0_3 = arith.constant 0 : index
    %c0_4 = arith.constant 0 : index
    %3 = vector.load %arg3[%c0_3, %c0_4] : memref<64x1xf32, #tpu.memory_space<vmem>>, vector<64x1xf32>
    %4 = vector.broadcast %3 : vector<64x1xf32> to vector<64x128xf32>
    %5 = arith.addf %2, %4 : vector<64x128xf32>
    %cst_5 = arith.constant 0.000000e+00 : f32
    %6 = vector.broadcast %cst_5 : f32 to vector<64x128xf32>
    %7 = arith.maximumf %5, %6 : vector<64x128xf32>
    %c0_6 = arith.constant 0 : index
    %c0_7 = arith.constant 0 : index
    %8 = vector.load %arg4[%c0_6, %c0_7] : memref<32x64xbf16, #tpu.memory_space<vmem>>, vector<32x64xbf16>
    %9 = arith.truncf %7 : vector<64x128xf32> to vector<64x128xbf16>
    %cst_8 = arith.constant dense<0.000000e+00> : vector<32x128xf32>
    %10 = tpu.matmul %8, %9, %cst_8 {dimension_numbers = #tpu.dot_dimension_numbers<[1], [0], [0], [1], [0, 0, 1, 1], [], []>} : vector<32x64xbf16>, vector<64x128xbf16>, vector<32x128xf32> -> vector<32x128xf32>
    %c0_9 = arith.constant 0 : index
    %c0_10 = arith.constant 0 : index
    %11 = vector.load %arg5[%c0_9, %c0_10] : memref<32x1xf32, #tpu.memory_space<vmem>>, vector<32x1xf32>
    %12 = vector.broadcast %11 : vector<32x1xf32> to vector<32x128xf32>
    %13 = arith.addf %10, %12 : vector<32x128xf32>
    %cst_11 = arith.constant 0.000000e+00 : f32
    %14 = vector.broadcast %cst_11 : f32 to vector<32x128xf32>
    %15 = arith.maximumf %13, %14 : vector<32x128xf32>
    %c0_12 = arith.constant 0 : index
    %c0_13 = arith.constant 0 : index
    %16 = vector.load %arg6[%c0_12, %c0_13] : memref<16x32xbf16, #tpu.memory_space<vmem>>, vector<16x32xbf16>
    %17 = arith.truncf %15 : vector<32x128xf32> to vector<32x128xbf16>
    %cst_14 = arith.constant dense<0.000000e+00> : vector<16x128xf32>
    %18 = tpu.matmul %16, %17, %cst_14 {dimension_numbers = #tpu.dot_dimension_numbers<[1], [0], [0], [1], [0, 0, 1, 1], [], []>} : vector<16x32xbf16>, vector<32x128xbf16>, vector<16x128xf32> -> vector<16x128xf32>
    %c0_15 = arith.constant 0 : index
    %c0_16 = arith.constant 0 : index
    %19 = vector.load %arg7[%c0_15, %c0_16] : memref<16x1xf32, #tpu.memory_space<vmem>>, vector<16x1xf32>
    %20 = vector.broadcast %19 : vector<16x1xf32> to vector<16x128xf32>
    %21 = arith.addf %18, %20 : vector<16x128xf32>
    %cst_17 = arith.constant 0.000000e+00 : f32
    %22 = vector.broadcast %cst_17 : f32 to vector<16x128xf32>
    %23 = arith.maximumf %21, %22 : vector<16x128xf32>
    %c0_18 = arith.constant 0 : index
    %c0_19 = arith.constant 0 : index
    %24 = vector.load %arg8[%c0_18, %c0_19] : memref<2x16xbf16, #tpu.memory_space<vmem>>, vector<2x16xbf16>
    %25 = arith.truncf %23 : vector<16x128xf32> to vector<16x128xbf16>
    %cst_20 = arith.constant dense<0.000000e+00> : vector<2x128xf32>
    %26 = tpu.matmul %24, %25, %cst_20 {dimension_numbers = #tpu.dot_dimension_numbers<[1], [0], [0], [1], [0, 0, 1, 1], [], []>} : vector<2x16xbf16>, vector<16x128xbf16>, vector<2x128xf32> -> vector<2x128xf32>
    %c0_21 = arith.constant 0 : index
    %c0_22 = arith.constant 0 : index
    %27 = vector.load %arg9[%c0_21, %c0_22] : memref<2x1xf32, #tpu.memory_space<vmem>>, vector<2x1xf32>
    %28 = vector.broadcast %27 : vector<2x1xf32> to vector<2x128xf32>
    %29 = arith.addf %26, %28 : vector<2x128xf32>
    %c0_23 = arith.constant 0 : index
    %c0_24 = arith.constant 0 : index
    %30 = vector.load %arg10[%c0_23, %c0_24] : memref<2x128xf32, #tpu.memory_space<vmem>>, vector<2x128xf32>
    tpu.vector_store %arg10[%c0_23, %c0_24], %29 {strides = array<i32>} : memref<2x128xf32, #tpu.memory_space<vmem>>, vector<2x128xf32>,
    return
  }
  func.func @transform_0(%arg0: i32) -> (i32, i32) {
    %c0_i32 = arith.constant 0 : i32
    %c0_i32_0 = arith.constant 0 : i32
    return %c0_i32, %arg0 : i32, i32
  }
  func.func @transform_1(%arg0: i32) -> (i32, i32) {
    %c0_i32 = arith.constant 0 : i32
    %c0_i32_0 = arith.constant 0 : i32
    %c0_i32_1 = arith.constant 0 : i32
    return %c0_i32, %c0_i32_0 : i32, i32
  }
  func.func @transform_2(%arg0: i32) -> (i32, i32) {
    %c0_i32 = arith.constant 0 : i32
    %c0_i32_0 = arith.constant 0 : i32
    %c0_i32_1 = arith.constant 0 : i32
    return %c0_i32, %c0_i32_0 : i32, i32
  }
  func.func @transform_3(%arg0: i32) -> (i32, i32) {
    %c0_i32 = arith.constant 0 : i32
    %c0_i32_0 = arith.constant 0 : i32
    %c0_i32_1 = arith.constant 0 : i32
    return %c0_i32, %c0_i32_0 : i32, i32
  }
  func.func @transform_4(%arg0: i32) -> (i32, i32) {
    %c0_i32 = arith.constant 0 : i32
    %c0_i32_0 = arith.constant 0 : i32
    %c0_i32_1 = arith.constant 0 : i32
    return %c0_i32, %c0_i32_0 : i32, i32
  }
  func.func @transform_5(%arg0: i32) -> (i32, i32) {
    %c0_i32 = arith.constant 0 : i32
    %c0_i32_0 = arith.constant 0 : i32
    %c0_i32_1 = arith.constant 0 : i32
    return %c0_i32, %c0_i32_0 : i32, i32
  }
  func.func @transform_6(%arg0: i32) -> (i32, i32) {
    %c0_i32 = arith.constant 0 : i32
    %c0_i32_0 = arith.constant 0 : i32
    %c0_i32_1 = arith.constant 0 : i32
    return %c0_i32, %c0_i32_0 : i32, i32
  }
  func.func @transform_7(%arg0: i32) -> (i32, i32) {
    %c0_i32 = arith.constant 0 : i32
    %c0_i32_0 = arith.constant 0 : i32
    %c0_i32_1 = arith.constant 0 : i32
    return %c0_i32, %c0_i32_0 : i32, i32
  }
  func.func @transform_8(%arg0: i32) -> (i32, i32) {
    %c0_i32 = arith.constant 0 : i32
    %c0_i32_0 = arith.constant 0 : i32
    %c0_i32_1 = arith.constant 0 : i32
    return %c0_i32, %c0_i32_0 : i32, i32
  }
  func.func @transform_9(%arg0: i32) -> (i32, i32) {
    %c0_i32 = arith.constant 0 : i32
    %c0_i32_0 = arith.constant 0 : i32
    return %c0_i32, %arg0 : i32, i32
  }
}

</mosaic_0001>

<bundles_post_ra>
// kernel: tpu_custom_call.1
= control target key start
LH: loop header
LB: loop body
LE: loop exit
PB: predicated region body
PF: predicated region fallthrough
CT: control target
= control target key end

     0   :  { %vm130_vm0 = vcmask 1044480   ;;  %vm131_vm1 = vcmask 1045504   ;;  %v554_v2 = vmov 65535   ;;  %vm117_vm2 = vcmask 89088   ;;  %s699_s0 = inlined_call_operand.vmem [shape: bf16[11,128], index: 0, kind: input, shape index: {}]   ;;  %s700_s1 = inlined_call_operand.vmem [shape: bf16[64,11], index: 1, kind: input, shape index: {}]   ;;  %s701_s2 = inlined_call_operand.vmem [shape: f32[64,1], index: 2, kind: input, shape index: {}]   ;;  %s702_s3 = inlined_call_operand.vmem [shape: bf16[32,64], index: 3, kind: input, shape index: {}]   ;;  %s703_s4 = inlined_call_operand.vmem [shape: f32[32,1], index: 4, kind: input, shape index: {}]   ;;  %s704_s5 = inlined_call_operand.vmem [shape: bf16[16,32], index: 5, kind: input, shape index: {}]   ;;  %s705_s6 = inlined_call_operand.vmem [shape: f32[16,1], index: 6, kind: input, shape index: {}]   ;;  %s706_s7 = inlined_call_operand.vmem [shape: bf16[2,16], index: 7, kind: input, shape index: {}]   ;;  %s707_s8 = inlined_call_operand.vmem [shape: f32[2,1], index: 8, kind: input, shape index: {}]   ;;  %s708_s9 = inlined_call_operand.hbm [shape: f32[2,128], index: 9, kind: output, shape index: {}]  }
   0x1   :  { %v522_v0 = vld [vmem:[%s699_s0] sm:$0x3f]   ;;  %v132_v3 = vsel %vm130_vm0, 4294967295, %v554_v2  ;;  %v555_v6 = vmov 0   ;;  %v524_v8 = vld [vmem:[%s700_s1 + $0x8] sm:$0xff]   ;;  %v46_v9 = vld [vmem:[%s701_s2 + $0x10] sm:$0xff] }
   0x2   :  { %v523_v1 = vld [vmem:[%s700_s1] sm:$0xff]   ;;  %v133_v4 = vsel %vm131_vm1, %v132_v3, 0  ;;  %520 = vset.pattern.permute.xlu0 %v555_v6  ;;  %521 = vset.pattern.permute.xlu1 %v555_v6  ;;  %v525_v10 = vld [vmem:[%s700_s1 + $0x10] sm:$0xff]   ;;  %v45_v11 = vld [vmem:[%s701_s2 + $0x8] sm:$0xff] }
   0x3   :  { %481 = vmatprep.mubr.msk.bf16.mxu0 %vm117_vm2, %v523_v1  ;;  %v135_v5 = vand.u32 %v522_v0, %v133_v4  ;;  %v44_v7 = vld [vmem:[%s701_s2] sm:$0xff]  ;;  %64 = vperm.xlu1 %521, %v46_v9   ;;  %v47_v12 = vld [vmem:[%s701_s2 + $0x18] sm:$0xff]  ;;  %v49_v14 = vld [vmem:[%s701_s2 + $0x28] sm:$0xff] }
   0x4   :  { %54 = vperm.xlu0 %520, %v44_v7   ;;  %v48_v13 = vld [vmem:[%s701_s2 + $0x20] sm:$0xff] }
   0x5   :  { %479 = vmatprep.subr.bf16.mxu0 %v135_v5 }
   0x6   :  { %480 = vmatpush3.bf16.msra.mxu0 %v135_v5 }
   0x7   :  { %69 = vperm.xlu1 %521, %v47_v12  }
   0x8   :  { %59 = vperm.xlu0 %520, %v45_v11  }
   0x9   :  { %482 = vmatmul.mubr.msk.bf16.vlgmr.msra.gmra.mrb[0].mxu0 %vm117_vm2, %v524_v8 }
   0xa   :  { %485 = vmatprep.mubr.msk.bf16.mxu0 %vm117_vm2, %v525_v10 }
   0xb   :  { %14 = vsyncpa [#allocation3], 0  ;;  %v526_v15 = vld [vmem:[%s700_s1 + $0x18] sm:$0xff]   ;;  %v50_v16 = vld [vmem:[%s701_s2 + $0x30] sm:$0xff]  ;;  %79 = vperm.xlu1 %521, %v49_v14   ;;  %vm252_vm3 = vcmask 523264   ;;  %v556_v63 = vmov 0.0  }
   0xc   :  { %74 = vperm.xlu0 %520, %v48_v13   ;;  %v51_v17 = vld [vmem:[%s701_s2 + $0x38] sm:$0xff]  ;;  %v218_v18 = vld [vmem:[%s703_s4] sm:$0xff]  ;;  %v219_v19 = vld [vmem:[%s703_s4 + $0x8] sm:$0xff]  ;;  %501 = vmatprep.subr.bf16.mxu0 %v556_v63  ;;  %vm557_vm4 = vmmov 0   ;;  %vm333_vm5 = vcmask 261120   ;;  %vm388_vm6 = vcmask 130048  }
   0xd   :  { %v220_v20 = vld [vmem:[%s703_s4 + $0x10] sm:$0xff]  ;;  %v221_v21 = vld [vmem:[%s703_s4 + $0x18] sm:$0xff]  ;;  %v316_v22 = vld [vmem:[%s705_s6] sm:$0xff] }
   0xe   :  { %v317_v23 = vld [vmem:[%s705_s6 + $0x8] sm:$0xff]  ;;  %v382_v24 = vld [vmem:[%s707_s8] sm:$0x3] }
   0xf   :  { %89 = vperm.xlu1 %521, %v51_v17   ;;  %v527_v25 = vld [vmem:[%s702_s3] sm:$0xff]   ;;  %v528_v62 = vld [vmem:[%s702_s3 + $0x8] sm:$0xff]  }
  0x10   :  { %84 = vperm.xlu0 %520, %v50_v16   ;;  %497 = vmatprep.mubr.msk.bf16.mxu1 %vm252_vm3, %v527_v25 }
  0x11   :  { %486 = vmatmul.mubr.msk.bf16.gmra.mrb[4].mxu0 %vm117_vm2, %v526_v15 }
  0x12   :  { %505 = vmatprep.mubr.msk.bf16.mxu0 %vm557_vm4, %v556_v63 }
  0x13   :  { %229 = vperm.xlu1 %521, %v219_v19  }
  0x14   :  { %224 = vperm.xlu0 %520, %v218_v18   ;;  %v529_v18 = vld [vmem:[%s704_s5] sm:$0xff]   ;;  %s558_s5 = smov [#allocation2]  }
  0x15   :  { %s439_s28 = sshll.u32 %s558_s5, 4  ;;  %s440_s28 = int_to_ptr.vmem [resolvable:$true] %s439_s28 }
  0x16   :  { %s530_s29 = scalar_lea.vmem %s440_s28, 32  ;;  %p535_p1 = scmp.lt.s32.totalorder %s440_s28, %s440_s28 }
  0x17   :  { %239 = vperm.xlu1 %521, %v221_v21   ;;  %p531_p0 = scmp.ne.s32.totalorder %s440_s28, %s530_s29  ;;  %p536_p2 = scmp.lt.s32.totalorder %s530_s29, %s530_s29 }
  0x18   :  { %234 = vperm.xlu0 %520, %v220_v20  }
  0x19   :  { %p537_p3 = por %p536_p2, %p535_p1 }
  0x1b   :  { %325 = vperm.xlu1 %521, %v317_v23   ;;  %p538_p4 = pnand %p537_p3, %p531_p0 }
  0x1c   :  { %320 = vperm.xlu0 %520, %v316_v22  }
  0x20   :  { %385 = vperm.xlu0 %520, %v382_v24  }
  0x82   :  { %v65_v27 = vpop.permute.xlu1 %64 }
  0x83   :  { %v55_v26 = vpop.permute.xlu0 %54 }
  0x86   :  { %v70_v29 = vpop.permute.xlu1 %69 }
  0x87   :  { %v60_v28 = vpop.permute.xlu0 %59 }
  0x8a   :  { %v80_v38 = vpop.permute.xlu1 %79 }
  0x8b   :  { %v75_v33 = vpop.permute.xlu0 %74 }
  0x8e   :  { %v90_v50 = vpop.permute.xlu1 %89 }
  0x8f   :  { %v85_v45 = vpop.permute.xlu0 %84 }
  0x92   :  { %v230_v1 = vpop.permute.xlu1 %229 }
  0x93   :  { %v225_v0 = vpop.permute.xlu0 %224 }
  0x96   :  { %v240_v6 = vpop.permute.xlu1 %239 }
  0x97   :  { %v235_v2 = vpop.permute.xlu0 %234 }
  0x9a   :  { %v326_v23 = vpop.permute.xlu1 %325 }
  0x9b   :  { %v321_v19 = vpop.permute.xlu0 %320 }
  0xdc   :  { %v483_v30 = vpop.f32.mrb[0].mxu0 }
  0xdd   :  { %v180_v31 = vadd.f32 %v483_v30, %v65_v27  ;;  %v171_v32 = vpop.f32.mrb[1].mxu0  ;;  %v380_v30 = vld [vmem:[%s706_s7] sm:$0x1] }
  0xde   :  { %v172_v34 = vadd.f32 %v171_v32, %v55_v26  ;;  %v484_v35 = vpop.f32.mrb[2].mxu0 }
  0xdf   :  { %v183_v36 = vadd.f32 %v484_v35, %v70_v29  ;;  %v174_v37 = vpop.f32.mrb[3].mxu0  ;;  %v204_v40 = vmax.f32 %v180_v31, 0.0  ;;  %v386_v31 = vpop.permute.xlu0 %385 }
  0xe0   :  { %v175_v39 = vadd.f32 %v174_v37, %v60_v28  ;;  %v202_v42 = vmax.f32 %v172_v34, 0.0 }
  0xe1   :  { %v205_v41 = vmax.f32 %v183_v36, 0.0 }
  0xe2   :  { %v203_v43 = vmax.f32 %v175_v39, 0.0 }
  0xe3   :  { %v215_v44 = vpack.c.bf16 %v205_v41, %v204_v40 }
  0xe4   :  { %v487_v46 = vpop.f32.mrb[4].mxu0  ;;  %v214_v47 = vpack.c.bf16 %v203_v43, %v202_v42 }
  0xe5   :  { %v196_v48 = vadd.f32 %v487_v46, %v85_v45  ;;  %v187_v49 = vpop.f32.mrb[5].mxu0 }
  0xe6   :  { %v188_v51 = vadd.f32 %v187_v49, %v75_v33  ;;  %v488_v52 = vpop.f32.mrb[6].mxu0  ;;  %489 = vmatprep.subr.bf16.mxu1 %v214_v47 }
  0xe7   :  { %v199_v53 = vadd.f32 %v488_v52, %v90_v50  ;;  %v190_v54 = vpop.f32.mrb[7].mxu0  ;;  %490 = vmatpush3.bf16.msra.mxu1 %v214_v47  ;;  %v208_v56 = vmax.f32 %v196_v48, 0.0 }
  0xe8   :  { %v191_v55 = vadd.f32 %v190_v54, %v80_v38  ;;  %491 = vmatprep.subr.bf16.mxu1 %v215_v44  ;;  %v206_v58 = vmax.f32 %v188_v51, 0.0 }
  0xe9   :  { %v209_v57 = vmax.f32 %v199_v53, 0.0 }
  0xea   :  { %v207_v59 = vmax.f32 %v191_v55, 0.0 }
  0xeb   :  { %v217_v60 = vpack.c.bf16 %v209_v57, %v208_v56  ;;  %492 = vmatpush3.bf16.msra.mxu1 %v215_v44 }
  0xec   :  { %v216_v61 = vpack.c.bf16 %v207_v59, %v206_v58 }
  0xee   :  { %493 = vmatprep.subr.bf16.mxu1 %v216_v61 }
  0xef   :  { %494 = vmatpush3.bf16.msra.mxu1 %v216_v61 }
  0xf0   :  { %495 = vmatprep.subr.bf16.mxu1 %v217_v60 }
  0xf3   :  { %496 = vmatpush3.bf16.msra.mxu1 %v217_v60 }
  0xf4   :  { %509 = vmatprep.subr.bf16.mxu1 %v556_v63 }
  0xf6   :  { %498 = vmatmul.mubr.msk.bf16.vlgmr.msra.gmra.mrb[0].mxu1 %vm252_vm3, %v528_v62 }
  0xf7   :  { %511 = vmatprep.mubr.msk.bf16.mxu1 %vm557_vm4, %v556_v63 }
 0x1c9   :  { %v499_v3 = vpop.f32.mrb[0].mxu1 }
 0x1ca   :  { %v302_v4 = vadd.f32 %v499_v3, %v235_v2  ;;  %v293_v5 = vpop.f32.mrb[1].mxu1 }
 0x1cb   :  { %v294_v7 = vadd.f32 %v293_v5, %v225_v0  ;;  %v500_v8 = vpop.f32.mrb[2].mxu1 }
 0x1cc   :  { %v305_v9 = vadd.f32 %v500_v8, %v240_v6  ;;  %v296_v10 = vpop.f32.mrb[3].mxu1  ;;  %v310_v12 = vmax.f32 %v302_v4, 0.0 }
 0x1cd   :  { %v297_v11 = vadd.f32 %v296_v10, %v230_v1  ;;  %v308_v14 = vmax.f32 %v294_v7, 0.0 }
 0x1ce   :  { %v311_v13 = vmax.f32 %v305_v9, 0.0 }
 0x1cf   :  { %v309_v15 = vmax.f32 %v297_v11, 0.0 }
 0x1d0   :  { %v315_v16 = vpack.c.bf16 %v311_v13, %v310_v12 }
 0x1d1   :  { %v314_v17 = vpack.c.bf16 %v309_v15, %v308_v14 }
 0x1d3   :  { %502 = vmatpush3.bf16.msra.mxu0 %v314_v17 }
 0x1d4   :  { %503 = vmatprep.subr.bf16.mxu0 %v556_v63 }
 0x1d7   :  { %504 = vmatpush3.bf16.msra.mxu0 %v315_v16 }
 0x1da   :  { %506 = vmatmul.mubr.msk.bf16.vlgmr.msra.gmra.mrb[8].mxu0 %vm333_vm5, %v529_v18 }
 0x2ad   :  { %v371_v20 = vpop.f32.mrb[8].mxu0 }
 0x2ae   :  { %v372_v21 = vadd.f32 %v371_v20, %v321_v19  ;;  %v507_v22 = vpop.f32.mrb[9].mxu0 }
 0x2af   :  { %v374_v24 = vpop.f32.mrb[10].mxu0 }
 0x2b0   :  { %v375_v25 = vadd.f32 %v374_v24, %v326_v23  ;;  %v508_v26 = vpop.f32.mrb[11].mxu0  ;;  %v378_v27 = vmax.f32 %v372_v21, 0.0 }
 0x2b2   :  { %v379_v28 = vmax.f32 %v375_v25, 0.0 }
 0x2b4   :  { %v381_v29 = vpack.c.bf16 %v379_v28, %v378_v27 }
 0x2b6   :  { %510 = vmatpush3.bf16.msra.mxu1 %v381_v29 }
 0x2b9   :  { %512 = vmatmul.mubr.msk.bf16.vlgmr.msra.gmra.mrb[4].mxu1 %vm388_vm6, %v380_v30 }
 0x38c   :  { %v426_v32 = vpop.f32.mrb[4].mxu1 }
 0x38d   :  { %v427_v33 = vadd.f32 %v426_v32, %v386_v31  ;;  %v513_v34 = vpop.f32.mrb[5].mxu1 }
 0x38e   :  { %v429_v35 = vpop.f32.mrb[6].mxu1 }
 0x38f   :  { %432 = vst [vmem:[#allocation2] sm:$0x3] %v427_v33  ;;  %v514_v36 = vpop.f32.mrb[7].mxu1 }
 0x390   :  { %541 = shalt.err (!%p538_p4)
}
 0x391   :  { %s542_s10 = scalar_lea.hbm %s708_s9, 32 }
 0x392   :  { %p543_p5 = scmp.ne.s32.totalorder %s708_s9, %s542_s10  ;;  %p546_p6 = scmp.lt.u32.totalorder %s542_s10, %s708_s9 }
 0x394   :  { %p548_p7 = pnand %p546_p6, %p543_p5 }
 0x396   :  { %551 = shalt.err (!%p548_p7)
}
 0x397   :  { %442 = dma.vmem_to_hbm [thread:$0]  %s440_s28, 32, %s708_s9, [#allocation3]  }
 0x398   :  { %552 = dma.done.wait [#allocation3], 32  }
 0x399   :  { %553 = vsyncadd [#allocation3], 4294967264 }
 0x39a   :  { %446 = vsyncpa [#allocation3], 1 }

</bundles_post_ra>
